<compile_context>
chip_gen: v7x
topology: tpu7x:2x2x1
jax: 0.10.0
libtpu: 0.0.40
codegen_flags: <defaults>
</compile_context>

<pallas_src>
import functools

import jax
import jax.numpy as jnp
from jax.experimental import pallas as pl
from jax.experimental.pallas import tpu as pltpu

_LANE = 128
_SUBLANE = 8
_NUM_CORE_SPLITS = 2           # leading "parallel" grid axis (v7x has 2 TCs)
_TARGET_BLOCK_BYTES = 4 << 20  # ~4 MiB per input per block


def _round_up(x, m):
    return ((x + m - 1) // m) * m


def _dice_kernel(pred_ref, true_ref, inter_ref, denom_ref, *,
                 block_rows, total_valid, tiles_per_core):
    """grid = (core_split, row_tiles); outputs are per-core partial (8,128) sums."""
    c = pl.program_id(0)
    i = pl.program_id(1)
    block_elems = block_rows * _LANE
    g = c * tiles_per_core + i          # global tile index (may run past the end)

    @pl.when(i == 0)
    def _init():
        inter_ref[...] = jnp.zeros_like(inter_ref)
        denom_ref[...] = jnp.zeros_like(denom_ref)

    x = pred_ref[...].astype(jnp.float32)
    # sigmoid(x) == 0.5*tanh(0.5*x)+0.5 : single EUP transcendental + 2 VPU ops.
    p = 0.5 * jnp.tanh(0.5 * x) + 0.5
    t = true_ref[...].astype(jnp.float32)

    nb = block_rows // _SUBLANE

    def _accum(pv, tv):
        # Sublane-aligned partial sums: pure VPU adds in the hot loop; the
        # cross-lane reduction to scalars happens once, in the wrapper.
        inter_ref[0] += (tv * pv).reshape(nb, _SUBLANE, _LANE).sum(axis=0)
        denom_ref[0] += (tv + pv).reshape(nb, _SUBLANE, _LANE).sum(axis=0)

    if _NUM_CORE_SPLITS * tiles_per_core * block_elems == total_valid:
        # Static: every tile on every core is exactly full -> never mask.
        _accum(p, t)
    else:
        rem = total_valid - g * block_elems   # valid elems in this tile (may be <= 0)

        @pl.when(rem >= block_elems)
        def _full():
            _accum(p, t)

        @pl.when(rem < block_elems)
        def _ragged():
            # Ragged tail / fully out-of-range tiles: edge-block contents are
            # unspecified, so mask BOTH streams.
            row = jax.lax.broadcasted_iota(jnp.int32, (block_rows, _LANE), 0)
            col = jax.lax.broadcasted_iota(jnp.int32, (block_rows, _LANE), 1)
            valid = (row * _LANE + col) < rem
            _accum(jnp.where(valid, p, 0.0), jnp.where(valid, t, 0.0))


def _canonicalize(x):
    """Flatten and keep the native (TPU-streamable) dtype; no f32 up-cast copies."""
    x = jnp.ravel(x)
    if x.dtype == jnp.bool_:
        x = x.astype(jnp.int8)
    elif jnp.dtype(x.dtype).itemsize > 4:   # 64-bit refs unsupported on TPU
        x = x.astype(jnp.float32)
    return x


def dice_loss(y_pred, y_true, smooth=1.0):
    """-dice_coef(sigmoid(y_pred), y_true), matching the torch DiceLoss module."""
    total = int(y_pred.size)

    pred_f = _canonicalize(y_pred)
    true_f = _canonicalize(y_true)

    # Dtype-aware sublane packing: f32 -> 8 rows, bf16 -> 16, int8 -> 32.
    def _sub_mult(dt):
        return _SUBLANE * max(1, 4 // jnp.dtype(dt).itemsize)

    sub_mult = max(_sub_mult(pred_f.dtype), _sub_mult(true_f.dtype))
    max_item = max(jnp.dtype(pred_f.dtype).itemsize,
                   jnp.dtype(true_f.dtype).itemsize)

    # Pad only to the minimal (sub_mult x 128) slab boundary; the ragged last
    # tile is handled by the in-kernel mask (no block-multiple padding copies).
    rows = _round_up(pl.cdiv(total, _LANE), sub_mult)
    padded = rows * _LANE
    if padded != total:
        pred_f = jnp.pad(pred_f, (0, padded - total))
        true_f = jnp.pad(true_f, (0, padded - total))
    pred2d = pred_f.reshape(rows, _LANE)
    true2d = true_f.reshape(rows, _LANE)

    # Large HBM-roofline tiles (~4 MiB per input per block), dtype/size capped.
    block_rows = (_TARGET_BLOCK_BYTES // (_LANE * max_item)) // sub_mult * sub_mult
    block_rows = max(sub_mult, block_rows)
    block_rows = min(block_rows, rows)
    tiles = pl.cdiv(rows, block_rows)
    tiles_per_core = pl.cdiv(tiles, _NUM_CORE_SPLITS)
    last_tile = tiles - 1

    def in_map(c, i):
        # Clamp so out-of-range tiles (odd/short tile counts) stay in bounds;
        # their contribution is masked away inside the kernel.
        return (jnp.minimum(c * tiles_per_core + i, last_tile), 0)

    # Explicit VMEM budget: 2 double-buffered input streams + margin.
    in_block_bytes = block_rows * _LANE * (
        jnp.dtype(pred_f.dtype).itemsize + jnp.dtype(true_f.dtype).itemsize)
    vmem_limit = int(min(48 << 20, max(16 << 20, 2 * in_block_bytes + (4 << 20))))

    kernel = functools.partial(_dice_kernel, block_rows=block_rows,
                               total_valid=total, tiles_per_core=tiles_per_core)

    inter_out, denom_out = pl.pallas_call(
        kernel,
        out_shape=(
            jax.ShapeDtypeStruct((_NUM_CORE_SPLITS, _SUBLANE, _LANE), jnp.float32),
            jax.ShapeDtypeStruct((_NUM_CORE_SPLITS, _SUBLANE, _LANE), jnp.float32),
        ),
        grid_spec=pltpu.PrefetchScalarGridSpec(
            num_scalar_prefetch=0,
            grid=(_NUM_CORE_SPLITS, tiles_per_core),
            in_specs=[
                pl.BlockSpec((block_rows, _LANE), in_map),
                pl.BlockSpec((block_rows, _LANE), in_map),
            ],
            out_specs=(
                pl.BlockSpec((1, _SUBLANE, _LANE), lambda c, i: (c, 0, 0)),
                pl.BlockSpec((1, _SUBLANE, _LANE), lambda c, i: (c, 0, 0)),
            ),
        ),
        compiler_params=pltpu.CompilerParams(
            dimension_semantics=("parallel", "arbitrary"),
            vmem_limit_bytes=vmem_limit),
    )(pred2d, true2d)

    inter = jnp.sum(inter_out)
    denom = jnp.sum(denom_out)
    smooth = jnp.float32(smooth)
    return -((2.0 * inter + smooth) / (denom + smooth))


def _dice_loss_ref(y_pred, y_true, smooth=1.0):
    p = jax.nn.sigmoid(y_pred.astype(jnp.float32)).ravel()
    t = y_true.astype(jnp.float32).ravel()
    inter = jnp.sum(t * p)
    return -((2.0 * inter + smooth) / (jnp.sum(t) + jnp.sum(p) + smooth))


if __name__ == "__main__":
    key = jax.random.PRNGKey(0)
    k1, k2 = jax.random.split(key)
    # NCHW logits and binary ground-truth masks.
    y_pred = jax.random.normal(k1, (2, 4, 16, 16), dtype=jnp.float32)
    y_true = (jax.random.uniform(k2, (2, 4, 16, 16)) > 0.5).astype(jnp.float32)

    loss = jax.block_until_ready(dice_loss(y_pred, y_true, smooth=1.0))
    ref = jax.block_until_ready(_dice_loss_ref(y_pred, y_true, smooth=1.0))
    assert jnp.allclose(loss, ref, rtol=1e-5, atol=1e-5), (loss, ref)

    # Non-divisible size: exercises the ragged-tail mask and the fully-masked
    # second-core tiles.
    k3, k4 = jax.random.split(k1)
    yp2 = jax.random.normal(k3, (3, 5, 17, 13), dtype=jnp.float32)
    yt2 = (jax.random.uniform(k4, (3, 5, 17, 13)) > 0.5).astype(jnp.float32)
    loss2 = jax.block_until_ready(dice_loss(yp2, yt2, smooth=1.0))
    ref2 = jax.block_until_ready(_dice_loss_ref(yp2, yt2, smooth=1.0))
    assert jnp.allclose(loss2, ref2, rtol=1e-5, atol=1e-5), (loss2, ref2)

    # Native narrow dtypes (bf16 logits + bool mask) stream without wrapper casts.
    yp3 = jax.random.normal(k3, (2, 4, 16, 16), dtype=jnp.bfloat16)
    yt3 = jax.random.uniform(k4, (2, 4, 16, 16)) > 0.5
    loss3 = jax.block_until_ready(dice_loss(yp3, yt3, smooth=1.0))
    ref3 = jax.block_until_ready(_dice_loss_ref(yp3.astype(jnp.float32),
                                                yt3.astype(jnp.float32), smooth=1.0))
    assert jnp.allclose(loss3, ref3, rtol=5e-3, atol=5e-3), (loss3, ref3)

    print("KERNEL_OK")
</pallas_src>

<mosaic_0001>
module attributes {stable_mosaic.version = 11 : i64} {
  func.func @_dice_kernel(%arg0: i32, %arg1: i32, %arg2: memref<16x128xf32, #tpu.memory_space<vmem>>, %arg3: memref<16x128xf32, #tpu.memory_space<vmem>>, %arg4: memref<1x8x128xf32, #tpu.memory_space<vmem>>, %arg5: memref<1x8x128xf32, #tpu.memory_space<vmem>>) attributes {dimension_semantics = [#tpu.dimension_semantics<parallel>, #tpu.dimension_semantics<arbitrary>], iteration_bounds = array<i64: 2, 1>, scalar_prefetch = 0 : i64, scratch_operands = 0 : i64, tpu.core_type = #tpu.core_type<tc>, window_params = [{transform_indices = @transform_0, window_bounds = array<i64: 16, 128>}, {transform_indices = @transform_1, window_bounds = array<i64: 16, 128>}, {transform_indices = @transform_2, window_bounds = array<i64: 1, 8, 128>}, {transform_indices = @transform_3, window_bounds = array<i64: 1, 8, 128>}]} {
    %c1_i32 = arith.constant 1 : i32
    %0 = arith.muli %arg0, %c1_i32 : i32
    %1 = arith.addi %0, %arg1 : i32
    %c0_i32 = arith.constant 0 : i32
    %2 = arith.cmpi eq, %arg1, %c0_i32 : i32
    %3 = arith.extui %2 : i1 to i32
    %c0_i32_0 = arith.constant 0 : i32
    %4 = arith.cmpi ne, %3, %c0_i32_0 : i32
    scf.if %4 {
      %cst_11 = arith.constant 0.000000e+00 : f32
      %22 = vector.broadcast %cst_11 : f32 to vector<1x8x128xf32>
      %c0_12 = arith.constant 0 : index
      %c0_13 = arith.constant 0 : index
      %c0_14 = arith.constant 0 : index
      %23 = vector.load %arg4[%c0_12, %c0_13, %c0_14] : memref<1x8x128xf32, #tpu.memory_space<vmem>>, vector<1x8x128xf32>
      tpu.vector_store %arg4[%c0_12, %c0_13, %c0_14], %22 {strides = array<i32>} : memref<1x8x128xf32, #tpu.memory_space<vmem>>, vector<1x8x128xf32>,
      %cst_15 = arith.constant 0.000000e+00 : f32
      %24 = vector.broadcast %cst_15 : f32 to vector<1x8x128xf32>
      %c0_16 = arith.constant 0 : index
      %c0_17 = arith.constant 0 : index
      %c0_18 = arith.constant 0 : index
      %25 = vector.load %arg5[%c0_16, %c0_17, %c0_18] : memref<1x8x128xf32, #tpu.memory_space<vmem>>, vector<1x8x128xf32>
      tpu.vector_store %arg5[%c0_16, %c0_17, %c0_18], %24 {strides = array<i32>} : memref<1x8x128xf32, #tpu.memory_space<vmem>>, vector<1x8x128xf32>,
    } else {
    }
    %c0 = arith.constant 0 : index
    %c0_1 = arith.constant 0 : index
    %5 = vector.load %arg2[%c0, %c0_1] : memref<16x128xf32, #tpu.memory_space<vmem>>, vector<16x128xf32>
    %cst = arith.constant 5.000000e-01 : f32
    %6 = vector.broadcast %cst : f32 to vector<16x128xf32>
    %7 = arith.mulf %6, %5 : vector<16x128xf32>
    %8 = math.tanh %7 : vector<16x128xf32>
    %cst_2 = arith.constant 5.000000e-01 : f32
    %9 = vector.broadcast %cst_2 : f32 to vector<16x128xf32>
    %10 = arith.mulf %9, %8 : vector<16x128xf32>
    %cst_3 = arith.constant 5.000000e-01 : f32
    %11 = vector.broadcast %cst_3 : f32 to vector<16x128xf32>
    %12 = arith.addf %10, %11 : vector<16x128xf32>
    %c0_4 = arith.constant 0 : index
    %c0_5 = arith.constant 0 : index
    %13 = vector.load %arg3[%c0_4, %c0_5] : memref<16x128xf32, #tpu.memory_space<vmem>>, vector<16x128xf32>
    %c2048_i32 = arith.constant 2048 : i32
    %14 = arith.muli %1, %c2048_i32 : i32
    %c2048_i32_6 = arith.constant 2048 : i32
    %15 = arith.subi %c2048_i32_6, %14 : i32
    %c2048_i32_7 = arith.constant 2048 : i32
    %16 = arith.cmpi sge, %15, %c2048_i32_7 : i32
    %17 = arith.extui %16 : i1 to i32
    %c0_i32_8 = arith.constant 0 : i32
    %18 = arith.cmpi ne, %17, %c0_i32_8 : i32
    scf.if %18 {
      %c0_11 = arith.constant 0 : index
      %c0_12 = arith.constant 0 : index
      %c0_13 = arith.constant 0 : index
      %22 = vector.load %arg4[%c0_11, %c0_12, %c0_13] : memref<1x8x128xf32, #tpu.memory_space<vmem>>, vector<1x8x128xf32>
      %23 = vector.shape_cast %22 : vector<1x8x128xf32> to vector<8x128xf32>
      %24 = arith.mulf %13, %12 : vector<16x128xf32>
      %25 = vector.shape_cast %24 : vector<16x128xf32> to vector<2x8x128xf32>
      %cst_14 = arith.constant dense<0.000000e+00> : vector<8x128xf32>
      %26 = vector.multi_reduction <add>, %25, %cst_14 [0] : vector<2x8x128xf32> to vector<8x128xf32>
      %27 = arith.addf %23, %26 : vector<8x128xf32>
      %c0_15 = arith.constant 0 : index
      %c0_16 = arith.constant 0 : index
      %c0_17 = arith.constant 0 : index
      %28 = vector.load %arg4[%c0_15, %c0_16, %c0_17] : memref<1x8x128xf32, #tpu.memory_space<vmem>>, vector<1x8x128xf32>
      %29 = vector.shape_cast %28 : vector<1x8x128xf32> to vector<8x128xf32>
      %30 = vector.shape_cast %27 : vector<8x128xf32> to vector<1x8x128xf32>
      tpu.vector_store %arg4[%c0_15, %c0_16, %c0_17], %30 {strides = array<i32>} : memref<1x8x128xf32, #tpu.memory_space<vmem>>, vector<1x8x128xf32>,
      %c0_18 = arith.constant 0 : index
      %c0_19 = arith.constant 0 : index
      %c0_20 = arith.constant 0 : index
      %31 = vector.load %arg5[%c0_18, %c0_19, %c0_20] : memref<1x8x128xf32, #tpu.memory_space<vmem>>, vector<1x8x128xf32>
      %32 = vector.shape_cast %31 : vector<1x8x128xf32> to vector<8x128xf32>
      %33 = arith.addf %13, %12 : vector<16x128xf32>
      %34 = vector.shape_cast %33 : vector<16x128xf32> to vector<2x8x128xf32>
      %cst_21 = arith.constant dense<0.000000e+00> : vector<8x128xf32>
      %35 = vector.multi_reduction <add>, %34, %cst_21 [0] : vector<2x8x128xf32> to vector<8x128xf32>
      %36 = arith.addf %32, %35 : vector<8x128xf32>
      %c0_22 = arith.constant 0 : index
      %c0_23 = arith.constant 0 : index
      %c0_24 = arith.constant 0 : index
      %37 = vector.load %arg5[%c0_22, %c0_23, %c0_24] : memref<1x8x128xf32, #tpu.memory_space<vmem>>, vector<1x8x128xf32>
      %38 = vector.shape_cast %37 : vector<1x8x128xf32> to vector<8x128xf32>
      %39 = vector.shape_cast %36 : vector<8x128xf32> to vector<1x8x128xf32>
      tpu.vector_store %arg5[%c0_22, %c0_23, %c0_24], %39 {strides = array<i32>} : memref<1x8x128xf32, #tpu.memory_space<vmem>>, vector<1x8x128xf32>,
    } else {
    }
    %c2048_i32_9 = arith.constant 2048 : i32
    %19 = arith.cmpi slt, %15, %c2048_i32_9 : i32
    %20 = arith.extui %19 : i1 to i32
    %c0_i32_10 = arith.constant 0 : i32
    %21 = arith.cmpi ne, %20, %c0_i32_10 : i32
    scf.if %21 {
      %22 = tpu.iota {dimensions = array<i32: 0>} : vector<16x128xi32>
      %23 = tpu.iota {dimensions = array<i32: 1>} : vector<16x128xi32>
      %c128_i32 = arith.constant 128 : i32
      %24 = vector.broadcast %c128_i32 : i32 to vector<16x128xi32>
      %25 = arith.muli %22, %24 : vector<16x128xi32>
      %26 = arith.addi %25, %23 : vector<16x128xi32>
      %27 = vector.broadcast %15 : i32 to vector<16x128xi32>
      %28 = arith.cmpi slt, %26, %27 : vector<16x128xi32>
      %cst_11 = arith.constant 0.000000e+00 : f32
      %29 = vector.broadcast %cst_11 : f32 to vector<16x128xf32>
      %30 = arith.select %28, %12, %29 : vector<16x128xi1>, vector<16x128xf32>
      %cst_12 = arith.constant 0.000000e+00 : f32
      %31 = vector.broadcast %cst_12 : f32 to vector<16x128xf32>
      %32 = arith.select %28, %13, %31 : vector<16x128xi1>, vector<16x128xf32>
      %c0_13 = arith.constant 0 : index
      %c0_14 = arith.constant 0 : index
      %c0_15 = arith.constant 0 : index
      %33 = vector.load %arg4[%c0_13, %c0_14, %c0_15] : memref<1x8x128xf32, #tpu.memory_space<vmem>>, vector<1x8x128xf32>
      %34 = vector.shape_cast %33 : vector<1x8x128xf32> to vector<8x128xf32>
      %35 = arith.mulf %32, %30 : vector<16x128xf32>
      %36 = vector.shape_cast %35 : vector<16x128xf32> to vector<2x8x128xf32>
      %cst_16 = arith.constant dense<0.000000e+00> : vector<8x128xf32>
      %37 = vector.multi_reduction <add>, %36, %cst_16 [0] : vector<2x8x128xf32> to vector<8x128xf32>
      %38 = arith.addf %34, %37 : vector<8x128xf32>
      %c0_17 = arith.constant 0 : index
      %c0_18 = arith.constant 0 : index
      %c0_19 = arith.constant 0 : index
      %39 = vector.load %arg4[%c0_17, %c0_18, %c0_19] : memref<1x8x128xf32, #tpu.memory_space<vmem>>, vector<1x8x128xf32>
      %40 = vector.shape_cast %39 : vector<1x8x128xf32> to vector<8x128xf32>
      %41 = vector.shape_cast %38 : vector<8x128xf32> to vector<1x8x128xf32>
      tpu.vector_store %arg4[%c0_17, %c0_18, %c0_19], %41 {strides = array<i32>} : memref<1x8x128xf32, #tpu.memory_space<vmem>>, vector<1x8x128xf32>,
      %c0_20 = arith.constant 0 : index
      %c0_21 = arith.constant 0 : index
      %c0_22 = arith.constant 0 : index
      %42 = vector.load %arg5[%c0_20, %c0_21, %c0_22] : memref<1x8x128xf32, #tpu.memory_space<vmem>>, vector<1x8x128xf32>
      %43 = vector.shape_cast %42 : vector<1x8x128xf32> to vector<8x128xf32>
      %44 = arith.addf %32, %30 : vector<16x128xf32>
      %45 = vector.shape_cast %44 : vector<16x128xf32> to vector<2x8x128xf32>
      %cst_23 = arith.constant dense<0.000000e+00> : vector<8x128xf32>
      %46 = vector.multi_reduction <add>, %45, %cst_23 [0] : vector<2x8x128xf32> to vector<8x128xf32>
      %47 = arith.addf %43, %46 : vector<8x128xf32>
      %c0_24 = arith.constant 0 : index
      %c0_25 = arith.constant 0 : index
      %c0_26 = arith.constant 0 : index
      %48 = vector.load %arg5[%c0_24, %c0_25, %c0_26] : memref<1x8x128xf32, #tpu.memory_space<vmem>>, vector<1x8x128xf32>
      %49 = vector.shape_cast %48 : vector<1x8x128xf32> to vector<8x128xf32>
      %50 = vector.shape_cast %47 : vector<8x128xf32> to vector<1x8x128xf32>
      tpu.vector_store %arg5[%c0_24, %c0_25, %c0_26], %50 {strides = array<i32>} : memref<1x8x128xf32, #tpu.memory_space<vmem>>, vector<1x8x128xf32>,
    } else {
    }
    return
  }
  func.func @transform_0(%arg0: i32, %arg1: i32) -> (i32, i32) {
    %c1_i32 = arith.constant 1 : i32
    %0 = arith.muli %arg0, %c1_i32 : i32
    %1 = arith.addi %0, %arg1 : i32
    %c0_i32 = arith.constant 0 : i32
    %2 = arith.minsi %1, %c0_i32 : i32
    %c0_i32_0 = arith.constant 0 : i32
    %c0_i32_1 = arith.constant 0 : i32
    return %2, %c0_i32_0 : i32, i32
  }
  func.func @transform_1(%arg0: i32, %arg1: i32) -> (i32, i32) {
    %c1_i32 = arith.constant 1 : i32
    %0 = arith.muli %arg0, %c1_i32 : i32
    %1 = arith.addi %0, %arg1 : i32
    %c0_i32 = arith.constant 0 : i32
    %2 = arith.minsi %1, %c0_i32 : i32
    %c0_i32_0 = arith.constant 0 : i32
    %c0_i32_1 = arith.constant 0 : i32
    return %2, %c0_i32_0 : i32, i32
  }
  func.func @transform_2(%arg0: i32, %arg1: i32) -> (i32, i32, i32) {
    %c0_i32 = arith.constant 0 : i32
    %c0_i32_0 = arith.constant 0 : i32
    %c0_i32_1 = arith.constant 0 : i32
    return %arg0, %c0_i32, %c0_i32_0 : i32, i32, i32
  }
  func.func @transform_3(%arg0: i32, %arg1: i32) -> (i32, i32, i32) {
    %c0_i32 = arith.constant 0 : i32
    %c0_i32_0 = arith.constant 0 : i32
    %c0_i32_1 = arith.constant 0 : i32
    return %arg0, %c0_i32, %c0_i32_0 : i32, i32, i32
  }
}

</mosaic_0001>

<bundles_post_ra>
// kernel: tpu_custom_call.1
= control target key start
LH: loop header
LB: loop body
LE: loop exit
PB: predicated region body
PF: predicated region fallthrough
CT: control target
= control target key end

     0   :  { %9 = vsyncpa [#allocation3], 0  ;;  %s1119_s0 = inlined_call_operand.hbm [shape: f32[16,128], index: 0, kind: input, shape index: {}]   ;;  %s1120_s1 = inlined_call_operand.hbm [shape: f32[16,128], index: 1, kind: input, shape index: {}]   ;;  %s1121_s2 = inlined_call_operand.hbm [shape: f32[2,8,128], index: 2, kind: output, shape index: {0}]   ;;  %s1122_s3 = inlined_call_operand.hbm [shape: f32[2,8,128], index: 3, kind: output, shape index: {1}]  }
   0x1   :  { %11 = vsyncpa [#allocation3 + $0x1], 0 }
   0x2   :  { %12 = vsyncpa [#allocation6], 0 }
   0x3   :  { %14 = vsyncpa [#allocation6 + $0x1], 0 }
   0x4   :  { %15 = vsyncpa [#allocation4], 0 }
   0x5   :  { %17 = vsyncpa [#allocation4 + $0x1], 0 }
   0x6   :  { %18 = vsyncpa [#allocation9], 0 }
   0x7   :  { %20 = vsyncpa [#allocation9 + $0x1], 0  ;;  %s869_s12 = smov 0   ;;  %s871_s13 = smov 0  }
   0x8   :  { %s873_s14 = smov 0   ;;  %s875_s15 = smov 0  }
   0x9   :  { %s877_s16 = smov 0   ;;  %s879_s17 = smov 0  }
   0xa   :  { %s881_s18 = smov 0   ;;  %s883_s19 = smov 0  }
   0xb LB: > { %s512_s20 = sadd.s32 4294967295, %s840_s19   ;;  %s513_s21 = sadd.s32 4294967294, %s840_s19   ;;  %s840_s19 = sphi %s883_s19, %s26_s19   ;;  %s836_s18 = sphi %s881_s18, %s1141_s18   ;;  %s832_s17 = sphi %s879_s17, %s1140_s17   ;;  %s828_s16 = sphi %s877_s16, %s1109_s16   ;;  %s824_s15 = sphi %s875_s15, %s1139_s15   ;;  %s820_s14 = sphi %s873_s14, %s1138_s14   ;;  %s816_s13 = sphi %s871_s13, %s1137_s13   ;;  %s812_s12 = sphi %s869_s12, %s1136_s12  }
   0xc   : > { %s38_s22 = sadd.s32 1, %s836_s18  ;;  %p809_p1 = scmp.ne.s32.totalorder %s828_s16, 0 }
   0xd   : > { %p40_p0 = scmp.ge.s32.totalorder %s38_s22, 2  ;;  %p59_p2 = scmp.eq.s32.totalorder %s840_s19, 0 }
   0xe   : > { %p64_p3 = scmp.ne.s32.totalorder %s828_s16, %s824_s15  ;;  %p65_p5 = scmp.eq.s32.totalorder %s512_s20, 0 }
   0xf   : > { %s1143_s22 = smov (%p40_p0, %s38_s22), 0  ;;  %p915_p4 = por %p809_p1, %p59_p2 }
  0x10   : > { %p919_p6 = por %p65_p5, %p64_p3  ;;  %s106_s25 = ssub.s32 %s836_s18, %s1143_s22 }
  0x11   : > { %p107_p7 = scmp.eq.s32.totalorder %s106_s25, 0  ;;  %s109_s26 = sadd.s32 1, %s820_s14 }
  0x12   : > { %s1126_s24 = scalar_select %p919_p6, 1, 0 }
  0x13   : > { %s927_s27 = scalar_select %p107_p7, %s820_s14, %s109_s26  }
  0x14   : > { %p119_p8 = scmp.ne.s32.totalorder %s820_s14, %s816_s13  ;;  %p120_p9 = scmp.eq.s32.totalorder %s512_s20, 1 }
  0x15   : > { %p125_p10 = scmp.ne.s32.totalorder %s816_s13, %s812_s12  ;;  %p126_p11 = scmp.eq.s32.totalorder %s513_s21, 1 }
  0x16   : > { %p933_p12 = por %p120_p9, %p119_p8  ;;  %p560_p1 = scmp.lt.s32.totalorder %s840_s19, 2 }
  0x17   : > { %p938_p0 = por %p126_p11, %p125_p10  ;;  %s842_s30 = smov [#allocation2]  }
  0x18   : > { %s1127_s28 = scalar_select %p933_p12, 1, 0 }
  0x19   : > { %s1128_s29 = scalar_select %p938_p0, 1, 0 }
  0x1a   : > { %s186_s4 = sshll.u32 %s842_s30, 4  ;;  %p945_p2 = pnand %p560_p1, %p915_p4  ;;  %s187_s4 = int_to_ptr.vmem [resolvable:$true] %s186_s4 }
  0x1b   : > { %s641_s8 = scalar_lea.hbm %s1119_s0, 256 }
  0x1c   : > { %p642_p3 = scmp.ne.s32.totalorder %s1119_s0, %s641_s8  ;;  %p643_p5 = pneg %p945_p2 }
  0x1d   : > { %p648_p8 = scmp.lt.u32.totalorder %s641_s8, %s641_s8  ;;  %p650_p9 = scmp.lt.u32.totalorder %s641_s8, %s1119_s0 }
  0x1e   : > { %p644_p7 = pnand %p643_p5, %p642_p3 }
  0x1f   : > { %p651_p10 = por %p650_p9, %p648_p8 }
  0x20   : > { %p645_p4 = pneg %p644_p7 }
  0x22   : > { %p652_p11 = pnand %p651_p10, %p645_p4 }
  0x24   : > { %655 = shalt.err (!%p652_p11)
}
  0x25   : > { %s656_s20 = scalar_lea.vmem %s187_s4, 256  ;;  %s663_s21 = scalar_lea.vmem %s187_s4, 512 }
  0x26   : > { %p657_p1 = scmp.ne.s32.totalorder %s187_s4, %s656_s20  ;;  %p664_p12 = scmp.lt.s32.totalorder %s187_s4, %s187_s4 }
  0x27   : > { %p665_p6 = scmp.lt.s32.totalorder %s663_s21, %s656_s20 }
  0x28   : > { %p659_p13 = pnand %p657_p1, %p643_p5 }
  0x29   : > { %p666_p3 = por %p665_p6, %p664_p12 }
  0x2a   : > { %p660_p0 = pneg %p659_p13 }
  0x2c   : > { %p667_p7 = pnand %p666_p3, %p660_p0 }
  0x2e   : > { %670 = shalt.err (!%p667_p7)
}
  0x2f   : > { %s843_s23 = smov 128   ;;  %s844_s25 = smov 8  }
  0x30   : > { %549 = dma.hbm_to_vmem [thread:$0]  (!%p945_p2), %s1119_s0, 256, %s187_s4, [#allocation3], %s843_s23, %s843_s23, %s844_s25  }
  0x31   : > { %p522_p13 = scmp.ge.s32.totalorder %s840_s19, 1  ;;  %p218_p4 = scmp.lt.s32.totalorder %s840_s19, 3 }
  0x32   : > { %s845_s7 = smov [#allocation5]   ;;  %s671_s11 = scalar_lea.hbm %s1120_s1, 256 }
  0x33   : > { %p976_p8 = pnand %p522_p13, %p218_p4  ;;  %s210_s8 = sshll.u32 %s845_s7, 4  ;;  %s211_s8 = int_to_ptr.vmem [resolvable:$true] %s210_s8 }
  0x34   : > { %p672_p6 = scmp.ne.s32.totalorder %s1120_s1, %s671_s11  ;;  %p678_p9 = scmp.lt.u32.totalorder %s671_s11, %s671_s11 }
  0x35   : > { %s1130_s6 = scalar_select %p976_p8, 1, 0 }
  0x36   : > { %p674_p12 = pnand %p672_p6, %p643_p5  ;;  %p680_p10 = scmp.lt.u32.totalorder %s671_s11, %s1120_s1 }
  0x38   : > { %p675_p0 = pneg %p674_p12  ;;  %p681_p11 = por %p680_p10, %p678_p9 }
  0x3a   : > { %p682_p1 = pnand %p681_p11, %p675_p0 }
  0x3c   : > { %685 = shalt.err (!%p682_p1)
}
  0x3d   : > { %s686_s26 = scalar_lea.vmem %s211_s8, 256  ;;  %s693_s30 = scalar_lea.vmem %s211_s8, 512 }
  0x3e   : > { %p687_p3 = scmp.ne.s32.totalorder %s211_s8, %s686_s26  ;;  %p694_p4 = scmp.lt.s32.totalorder %s211_s8, %s211_s8 }
  0x3f   : > { %p695_p8 = scmp.lt.s32.totalorder %s693_s30, %s686_s26 }
  0x40   : > { %p689_p7 = pnand %p687_p3, %p643_p5 }
  0x41   : > { %p696_p6 = por %p695_p8, %p694_p4 }
  0x42   : > { %p690_p13 = pneg %p689_p7 }
  0x44   : > { %p697_p12 = pnand %p696_p6, %p690_p13 }
  0x46   : > { %700 = shalt.err (!%p697_p12)
}
  0x47   : > { %552 = dma.hbm_to_vmem [thread:$0]  (!%p945_p2), %s1120_s1, 256, %s211_s8, [#allocation6], %s843_s23, %s843_s23, %s844_s25  }
  0x48   : > { %p1131_p0 = scmp.ne.s32.totalorder %s1130_s6, 0 }
  0x49   : > { %s224_s10 = sand.u32 (!%p1131_p0), 1, %s828_s16   ;;  %p1132_p5 = scmp.ne.s32.totalorder (!%p1131_p0), %s1126_s24, 0 }
  0x4a   : > { %222 = sbr.rel (%p1131_p0) target bundleno = 179 (0xb3), region = 28  ;;  %s523_s11 = sshll.u32 (!%p1131_p0), %s224_s10, 4 }
  0x4b   : > { %s225_s15 = scalar_lea.sflag (!%p1131_p0), [#allocation3], %s224_s10  ;;  %s228_s20 = scalar_lea.vmem (!%p1131_p0), [#allocation2], %s523_s11 }
  0x51   : > { %794 = dma.done.wait (%p1132_p5), %s225_s15, 256  }
  0x52   : > { %796 = vsyncadd (%p1132_p5), %s225_s15, 4294967040  ;;  %s234_s5 = scalar_lea.sflag [#allocation6], %s224_s10  ;;  %s237_s4 = scalar_lea.vmem [#allocation5], %s523_s11 }
  0x53   : > { %798 = dma.done.wait (%p1132_p5), %s234_s5, 256  }
  0x54   : > { %800 = vsyncadd (%p1132_p5), %s234_s5, 4294967040  ;;  %s1015_s23 = sand.u32 1, %s816_s13   ;;  %s527_s25 = sshll.u32 %s832_s17, 11  ;;  %v846_v0 = vmov 0.0   ;;  %v285_v1 = vld [vmem:[%s228_s20] sm:$0xff]  ;;  %v286_v2 = vld [vmem:[%s228_s20 + $0x8] sm:$0xff] }
  0x55   : > { %s525_s6 = sshll.u32 %s1015_s23, 3  ;;  %s1019_s8 = ssub.s32 2048, %s527_s25  ;;  %v295_v3 = vld [vmem:[%s237_s4] sm:$0xff]  ;;  %v287_v4 = vmul.f32 0.5, %v285_v1  ;;  %v288_v5 = vmul.f32 0.5, %v286_v2  ;;  %v296_v6 = vld [vmem:[%s237_s4 + $0x8] sm:$0xff] }
  0x56   : > { %s1021_s21 = scalar_lea.vmem [#allocation7], %s525_s6  ;;  %s1024_s26 = scalar_lea.vmem [#allocation8], %s525_s6 }
  0x57   : > { %283 = vst [vmem:[%s1021_s21] sm:$0xff] %v846_v0  ;;  %284 = vst [vmem:[%s1024_s26] sm:$0xff] %v846_v0  ;;  %637 = vtanh.f32 %v287_v4  ;;  %p528_p2 = scmp.lt.s32.totalorder %s1019_s8, 2048 }
  0x58   : > { %639 = vtanh.f32 %v288_v5 }
  0x5e   : > { %v303_v17 = vld [vmem:[%s1021_s21] sm:$0xff] (!%p528_p2)  ;;  %v309_v18 = vld [vmem:[%s1024_s26] sm:$0xff] (!%p528_p2) }
  0x5f   : > { %302 = sbr.rel (%p528_p2) target bundleno = 110 (0x6e), region = 44 }
  0x61   : > { %v638_v7 = vpop.eup %637 }
  0x62   : > { %v640_v8 = vpop.eup %639  ;;  %v291_v9 = vmul.f32 0.5, %v638_v7 }
  0x63   : > { %v292_v10 = vmul.f32 0.5, %v640_v8 }
  0x64   : > { %v293_v11 = vadd.f32 0.5, %v291_v9 }
  0x65   : > { %v294_v12 = vadd.f32 0.5, %v292_v10 }
  0x66   : > { %v304_v13 = vmul.f32 %v295_v3, %v293_v11  ;;  %v310_v15 = vadd.f32 %v295_v3, %v293_v11 }
  0x67   : > { %v305_v14 = vmul.f32 %v296_v6, %v294_v12  ;;  %v311_v16 = vadd.f32 %v296_v6, %v294_v12 }
  0x69   : > { %v306_v19 = vadd.f32 %v305_v14, %v304_v13  ;;  %v312_v20 = vadd.f32 %v311_v16, %v310_v15 }
  0x6b   : > { %v307_v21 = vadd.f32 %v306_v19, %v303_v17  ;;  %v313_v22 = vadd.f32 %v312_v20, %v309_v18 }
  0x6d   : > { %308 = vst [vmem:[%s1021_s21] sm:$0xff] %v307_v21  ;;  %314 = vst [vmem:[%s1024_s26] sm:$0xff] %v313_v22 }
  0x6e PF: > { %p529_p8 = scmp.ge.s32.totalorder %s1019_s8, 2048 }
  0x6f   : > { %v319_v23 = vlaneseq (!%p529_p8)  ;;  %v328_v28 = vstv (!%p529_p8), %s1019_s8 }
  0x70   : > { %318 = sbr.rel (%p529_p8) target bundleno = 130 (0x82), region = 48 }
  0x71   : > { %v320_v24 = vshrl.u32 (!%p529_p8), %v319_v23, 7  ;;  %v323_v25 = vand.u32 (!%p529_p8), 127, %v319_v23 }
  0x73   : > { %v321_v26 = vadd.s32 (!%p529_p8), 8, %v320_v24  ;;  %v324_v27 = vmul.u32 (!%p529_p8), 128, %v320_v24 }
  0x74   : > { %v335_v40 = vld [vmem:[%s1021_s21] sm:$0xff] (!%p529_p8)  ;;  %v341_v41 = vld [vmem:[%s1024_s26] sm:$0xff] (!%p529_p8) }
  0x75   : > { %v325_v29 = vmul.u32 (!%p529_p8), 128, %v321_v26  ;;  %v326_v30 = vadd.s32 (!%p529_p8), %v324_v27, %v323_v25 }
  0x77   : > { %v327_v31 = vadd.s32 %v325_v29, %v323_v25  ;;  %vm329_vm0 = vcmp.lt.s32.totalorder %v326_v30, %v328_v28 }
  0x78   : > { %v331_v32 = vsel %vm329_vm0, %v293_v11, 0.0  ;;  %v333_v33 = vsel %vm329_vm0, %v295_v3, 0.0 }
  0x79   : > { %vm330_vm1 = vcmp.lt.s32.totalorder %v327_v31, %v328_v28  ;;  %v336_v34 = vmul.f32 %v333_v33, %v331_v32  ;;  %v342_v35 = vadd.f32 %v333_v33, %v331_v32 }
  0x7a   : > { %v332_v36 = vsel %vm330_vm1, %v294_v12, 0.0  ;;  %v334_v37 = vsel %vm330_vm1, %v296_v6, 0.0 }
  0x7b   : > { %v337_v38 = vmul.f32 %v334_v37, %v332_v36  ;;  %v343_v39 = vadd.f32 %v334_v37, %v332_v36 }
  0x7d   : > { %v338_v42 = vadd.f32 %v337_v38, %v336_v34  ;;  %v344_v43 = vadd.f32 %v343_v39, %v342_v35 }
  0x7f   : > { %v339_v44 = vadd.f32 %v338_v42, %v335_v40  ;;  %v345_v45 = vadd.f32 %v344_v43, %v341_v41 }
  0x81   : > { %340 = vst [vmem:[%s1021_s21] sm:$0xff] %v339_v44  ;;  %346 = vst [vmem:[%s1024_s26] sm:$0xff] %v345_v45 }
  0x82 PF: > { %s532_s24 = sshll.u32 %s832_s17, 7  ;;  %s366_s10 = sshll.u32 %s1021_s21, 4  ;;  %s367_s10 = int_to_ptr.vmem [resolvable:$true] %s366_s10 }
  0x83   : > { %s1044_s9 = scalar_lea.hbm %s1121_s2, %s532_s24  ;;  %s348_s11 = scalar_lea.sflag [#allocation4], %s1015_s23 }
  0x84   : > { %s701_s15 = scalar_lea.vmem %s367_s10, 128  ;;  %p1133_p10 = scmp.ne.s32.totalorder %s1127_s28, 0 }
  0x85   : > { %p702_p9 = scmp.ne.s32.totalorder %s367_s10, %s701_s15  ;;  %s847_s20 = smov [#allocation7]  }
  0x86   : > { %s705_s5 = sshll.u32 %s847_s20, 4  ;;  %s706_s5 = int_to_ptr.vmem [resolvable:$false] %s705_s5 }
  0x87   : > { %p703_p11 = pnand %p702_p9, %p1133_p10  ;;  %s707_s4 = scalar_lea.vmem %s706_s5, 256 }
  0x88   : > { %p708_p3 = scmp.lt.s32.totalorder %s367_s10, %s706_s5  ;;  %p709_p7 = scmp.lt.s32.totalorder %s707_s4, %s701_s15 }
  0x89   : > { %p704_p1 = pneg %p703_p11 }
  0x8a   : > { %p710_p13 = por %p709_p7, %p708_p3 }
  0x8c   : > { %p711_p4 = pnand %p710_p13, %p704_p1 }
  0x8e   : > { %714 = shalt.err (!%p711_p4)
}
  0x8f   : > { %s715_s25 = scalar_lea.hbm %s1044_s9, 128  ;;  %s719_s21 = scalar_lea.hbm %s1121_s2, 256 }
  0x90   : > { %p716_p6 = scmp.ne.s32.totalorder %s1044_s9, %s715_s25  ;;  %p720_p5 = scmp.lt.u32.totalorder %s1044_s9, %s1121_s2 }
  0x91   : > { %p721_p2 = scmp.lt.u32.totalorder %s719_s21, %s715_s25  ;;  %p723_p9 = scmp.lt.u32.totalorder %s715_s25, %s1044_s9 }
  0x92   : > { %p717_p12 = pnand %p716_p6, %p1133_p10 }
  0x93   : > { %p722_p8 = por %p721_p2, %p720_p5 }
  0x94   : > { %p718_p0 = pneg %p717_p12 }
  0x95   : > { %p724_p11 = por %p723_p9, %p722_p8 }
  0x97   : > { %p725_p1 = pnand %p724_p11, %p718_p0 }
  0x99   : > { %728 = shalt.err (!%p725_p1)
}
  0x9a   : > { %542 = dma.vmem_to_hbm [thread:$0]  (%p1133_p10), %s367_s10, 128, %s1044_s9, %s348_s11  }
  0x9b   : > { %s1070_s5 = scalar_lea.hbm %s1122_s3, %s532_s24  ;;  %s379_s4 = sshll.u32 %s1024_s26, 4  ;;  %s380_s4 = int_to_ptr.vmem [resolvable:$true] %s379_s4 }
  0x9c   : > { %s353_s25 = scalar_lea.sflag [#allocation9], %s1015_s23  ;;  %s729_s6 = scalar_lea.vmem %s380_s4, 128 }
  0x9d   : > { %p730_p3 = scmp.ne.s32.totalorder %s380_s4, %s729_s6  ;;  %s848_s8 = smov [#allocation8]  }
  0x9e   : > { %s733_s21 = sshll.u32 %s848_s8, 4  ;;  %s734_s21 = int_to_ptr.vmem [resolvable:$false] %s733_s21 }
  0x9f   : > { %p731_p7 = pnand %p730_p3, %p1133_p10  ;;  %s735_s30 = scalar_lea.vmem %s734_s21, 256 }
  0xa0   : > { %p736_p4 = scmp.lt.s32.totalorder %s380_s4, %s734_s21  ;;  %p737_p6 = scmp.lt.s32.totalorder %s735_s30, %s729_s6 }
  0xa1   : > { %p732_p13 = pneg %p731_p7 }
  0xa2   : > { %p738_p12 = por %p737_p6, %p736_p4 }
  0xa4   : > { %p739_p0 = pnand %p738_p12, %p732_p13 }
  0xa6   : > { %742 = shalt.err (!%p739_p0)
}
  0xa7   : > { %s743_s17 = scalar_lea.hbm %s1070_s5, 128  ;;  %s747_s24 = scalar_lea.hbm %s1122_s3, 256 }
  0xa8   : > { %p744_p5 = scmp.ne.s32.totalorder %s1070_s5, %s743_s17  ;;  %p748_p9 = scmp.lt.u32.totalorder %s1070_s5, %s1122_s3 }
  0xa9   : > { %p749_p11 = scmp.lt.u32.totalorder %s747_s24, %s743_s17  ;;  %p751_p3 = scmp.lt.u32.totalorder %s743_s17, %s1070_s5 }
  0xaa   : > { %p745_p2 = pnand %p744_p5, %p1133_p10 }
  0xab   : > { %p750_p1 = por %p749_p11, %p748_p9 }
  0xac   : > { %p746_p8 = pneg %p745_p2 }
  0xad   : > { %p752_p7 = por %p751_p3, %p750_p1 }
  0xaf   : > { %p753_p13 = pnand %p752_p7, %p746_p8 }
  0xb1   : > { %756 = shalt.err (!%p753_p13)
}
  0xb2   : > { %543 = dma.vmem_to_hbm [thread:$0]  (%p1133_p10), %s380_s4, 128, %s1070_s5, %s353_s25  }
  0xb3 PF: > { %s391_s11 = sand.u32 1, %s812_s12   ;;  %p1134_p4 = scmp.ne.s32.totalorder %s1128_s29, 0 }
  0xb4   : > { %p1135_p6 = scmp.ge.s32.totalorder %s840_s19, 2  ;;  %s392_s7 = scalar_lea.sflag [#allocation4], %s391_s11 }
  0xb6   : > { %p554_p12 = pnand %p1135_p6, %p1134_p4 }
  0xb8   : > { %802 = dma.done.wait (!%p554_p12), %s392_s7, 128  }
  0xb9   : > { %804 = vsyncadd (!%p554_p12), %s392_s7, 4294967168  ;;  %s401_s15 = scalar_lea.sflag [#allocation9], %s391_s11 }
  0xba   : > { %806 = dma.done.wait (!%p554_p12), %s401_s15, 128  }
  0xbb   : > { %808 = vsyncadd (!%p554_p12), %s401_s15, 4294967168  ;;  %s26_s19 = sadd.s32 1, %s840_s19   ;;  %s1136_s12 = smov %s816_s13 }
  0xbc   : > { %p23_p0 = scmp.ge.s32.totalorder %s26_s19, 4   ;;  %s1137_s13 = smov %s820_s14 }
  0xbd   : > { %s1138_s14 = smov %s927_s27  ;;  %s1139_s15 = smov %s828_s16 }
  0xbe   : > { %s1109_s16 = smov 0   ;;  %s1140_s17 = smov %s836_s18 }
  0xbf   : > { %s1141_s18 = smov %s1143_s22  ;;  %25 = sbr.rel (!%p23_p0) target bundleno = 11 (0xb), region = 115 }
  0xc6   :  { %406 = vsyncpa [#allocation3], 1 }
  0xc7   :  { %408 = vsyncpa [#allocation3 + $0x1], 1 }
  0xc8   :  { %409 = vsyncpa [#allocation6], 1 }
  0xc9   :  { %411 = vsyncpa [#allocation6 + $0x1], 1 }
  0xca   :  { %412 = vsyncpa [#allocation4], 1 }
  0xcb   :  { %414 = vsyncpa [#allocation4 + $0x1], 1 }
  0xcc   :  { %415 = vsyncpa [#allocation9], 1 }
  0xcd   :  { %417 = vsyncpa [#allocation9 + $0x1], 1 }

</bundles_post_ra>
